<compile_context>
chip_gen: v6e
topology: v6e:2x2x1
jax: 0.10.0
libtpu: 0.0.40
codegen_flags: <defaults>
</compile_context>

<pallas_src>
import functools

import jax
import jax.numpy as jnp
from jax import lax
from jax.experimental import pallas as pl
from jax.experimental.pallas import tpu as pltpu


def _tensorcores_per_chip():
    """Best-effort query of TensorCores per chip (v7x has 2, v5e/v6e have 1)."""
    try:
        kind = jax.devices()[0].device_kind.lower()
    except Exception:
        return 1
    return 2 if "v7" in kind else 1


def _mul_const_u32(x, n):
    """x * n for a static python int n; use a shift when n is a power of two."""
    n = int(n)
    if n > 0 and (n & (n - 1)) == 0:
        return lax.shift_left(x, jnp.uint32(n.bit_length() - 1))
    return x * jnp.uint32(n)


def _keep_mask(shape, b_base_u32, seed_mix):
    """Deterministic Bernoulli(0.5) keep-mask via a lowbias32-style hash.

    Uses only jnp/lax uint32 ops so it lowers on the TPU VPU (and in interpret
    mode).  `shape` is (Bblk, Hq, Hk); the hash is over the *global* linear
    index so grid / gridless layouts produce the identical mask.
    """
    _, r_dim, c_dim = shape
    b = lax.broadcasted_iota(jnp.uint32, shape, 0) + b_base_u32
    r = lax.broadcasted_iota(jnp.uint32, shape, 1)
    c = lax.broadcasted_iota(jnp.uint32, shape, 2)
    x = _mul_const_u32(_mul_const_u32(b, r_dim) + r, c_dim) + c
    x = x ^ jnp.uint32(seed_mix)
    x = x ^ lax.shift_right_logical(x, jnp.uint32(16))
    x = x * jnp.uint32(0x7FEB352D)
    x = x ^ lax.shift_right_logical(x, jnp.uint32(15))
    x = x * jnp.uint32(0x846CA68B)
    x = x ^ lax.shift_right_logical(x, jnp.uint32(16))
    # Top (strongest) bit -> Bernoulli(0.5)
    return lax.shift_right_logical(x, jnp.uint32(31)) == jnp.uint32(0)


def _attn_dropout_kernel(hs_ref, v_ref, o_ref, *, hidden_size, seed, use_grid):
    Bblk, S, D = hs_ref.shape
    Hq = hidden_size
    Hk = S - Hq
    inv_s = 1.0 / float(Hk) ** 0.5                      # compile-time constant
    seed_mix = (int(seed) * 0x9E3779B1) & 0xFFFFFFFF    # compile-time constant

    if use_grid:
        b_base = (pl.program_id(0) * Bblk).astype(jnp.uint32)
    else:
        b_base = jnp.uint32(0)

    hs = hs_ref[...]                                     # [Bblk, S, D]
    # Slice q/k in f32 (Hq=8 is sublane-aligned), fold 1/sqrt(Hk) into q,
    # then cast MXU operands to bf16 (f32 accumulation below).
    q = (hs[:, :Hq, :] * jnp.float32(inv_s)).astype(jnp.bfloat16)   # [Bblk, Hq, D]
    k = hs[:, Hq:, :].astype(jnp.bfloat16)                          # [Bblk, Hk, D]
    vb = v_ref[...].astype(jnp.bfloat16)                            # [Bblk, Hk, D]

    # qk = (q / sqrt(Hk)) @ k^T  -- batched, contract last dims, no transpose.
    qk = jnp.einsum("bqd,bkd->bqk", q, k,
                    preferred_element_type=jnp.float32)             # [Bblk, Hq, Hk]

    # Numerically stable softmax over the last dim.
    m = jnp.max(qk, axis=-1, keepdims=True)
    e = jnp.exp(qk - m)
    denom = jnp.sum(e, axis=-1, keepdims=True)

    # Dropout p=0.5 (training semantics: keep w.p. 0.5, scale kept by 2).
    keep = _keep_mask((Bblk, Hq, Hk), b_base, seed_mix)
    # Fold the x2 dropout scale into the softmax normalization; reciprocal on EUP.
    scale = 2.0 * pl.reciprocal(denom, approx=True)                 # [Bblk, Hq, 1]
    p = jnp.where(keep, e * scale, jnp.float32(0.0))                # [Bblk, Hq, Hk]

    # output = dropout(softmax(qk)) @ v   (MXU, bf16 operands, f32 accumulate)
    out = jnp.einsum("bqk,bkd->bqd", p.astype(jnp.bfloat16), vb,
                     preferred_element_type=jnp.float32)            # [Bblk, Hq, D]
    o_ref[...] = out.astype(o_ref.dtype)


def model_forward(hidden_states, v, hidden_size, seed=0):
    """hidden_states: [B, S, D], v: [B, S - hidden_size, D].

    `seed` should be varied per training step if fresh dropout masks are wanted.
    """
    B, S, D = hidden_states.shape
    Hq = hidden_size
    Hk = S - Hq
    assert v.shape == (B, Hk, D)

    # On 2-TensorCore chips (v7x), shard the batch across cores via a parallel
    # grid axis; on single-TC chips keep the gridless, fully VMEM-resident form.
    use_grid = (B > 1) and (_tensorcores_per_chip() >= 2)

    kernel = functools.partial(
        _attn_dropout_kernel, hidden_size=Hq, seed=seed, use_grid=use_grid)

    cost = pl.CostEstimate(
        flops=4 * B * Hq * Hk * D,
        transcendentals=B * Hq * Hk,
        bytes_accessed=4 * (B * S * D + B * Hk * D + B * Hq * D),
    )

    out_shape = jax.ShapeDtypeStruct((B, Hq, D), hidden_states.dtype)

    if use_grid:
        return pl.pallas_call(
            kernel,
            out_shape=out_shape,
            grid=(B,),
            in_specs=[
                pl.BlockSpec((1, S, D), lambda b: (b, 0, 0)),
                pl.BlockSpec((1, Hk, D), lambda b: (b, 0, 0)),
            ],
            out_specs=pl.BlockSpec((1, Hq, D), lambda b: (b, 0, 0)),
            compiler_params=pltpu.CompilerParams(
                dimension_semantics=("parallel",)),
            cost_estimate=cost,
        )(hidden_states, v)

    # Gridless: the whole ~400 KB problem is VMEM-resident in one invocation.
    return pl.pallas_call(
        kernel,
        out_shape=out_shape,
        in_specs=[
            pl.BlockSpec((B, S, D), lambda: (0, 0, 0)),
            pl.BlockSpec((B, Hk, D), lambda: (0, 0, 0)),
        ],
        out_specs=pl.BlockSpec((B, Hq, D), lambda: (0, 0, 0)),
        cost_estimate=cost,
    )(hidden_states, v)


if __name__ == "__main__":
    key = jax.random.PRNGKey(0)
    k1, k2 = jax.random.split(key)

    B = 2
    hidden_size = 8          # Hq (sublane-aligned split for f32)
    Hk = 128                 # number of k/v rows
    D = 128                  # feature dim (lane-dense output)
    S = hidden_size + Hk

    hidden_states = jax.random.normal(k1, (B, S, D), dtype=jnp.float32)
    v = jax.random.normal(k2, (B, Hk, D), dtype=jnp.float32)

    out = model_forward(hidden_states, v, hidden_size, seed=0)
    out = jax.block_until_ready(out)
    assert out.shape == (B, hidden_size, D)
    assert bool(jnp.all(jnp.isfinite(out)))
    print("KERNEL_OK")
</pallas_src>

<mosaic_0001>
module attributes {stable_mosaic.version = 11 : i64} {
  func.func @_attn_dropout_kernel(%arg0: memref<2x136x128xf32, #tpu.memory_space<vmem>>, %arg1: memref<2x128x128xf32, #tpu.memory_space<vmem>>, %arg2: memref<2x8x128xf32, #tpu.memory_space<vmem>>) attributes {dimension_semantics = [], scalar_prefetch = 0 : i64, scratch_operands = 0 : i64, tpu.core_type = #tpu.core_type<tc>} {
    %c0 = arith.constant 0 : index
    %c0_0 = arith.constant 0 : index
    %c0_1 = arith.constant 0 : index
    %0 = vector.load %arg0[%c0, %c0_0, %c0_1] : memref<2x136x128xf32, #tpu.memory_space<vmem>>, vector<2x136x128xf32>
    %1 = vector.extract_strided_slice %0 {offsets = [0, 0, 0], sizes = [2, 8, 128], strides = [1, 1, 1]} : vector<2x136x128xf32> to vector<2x8x128xf32>
    %cst = arith.constant 0.0883883461 : f32
    %2 = vector.broadcast %cst : f32 to vector<2x8x128xf32>
    %3 = arith.mulf %1, %2 : vector<2x8x128xf32>
    %4 = arith.truncf %3 : vector<2x8x128xf32> to vector<2x8x128xbf16>
    %5 = vector.extract_strided_slice %0 {offsets = [0, 8, 0], sizes = [2, 128, 128], strides = [1, 1, 1]} : vector<2x136x128xf32> to vector<2x128x128xf32>
    %6 = arith.truncf %5 : vector<2x128x128xf32> to vector<2x128x128xbf16>
    %c0_2 = arith.constant 0 : index
    %c0_3 = arith.constant 0 : index
    %c0_4 = arith.constant 0 : index
    %7 = vector.load %arg1[%c0_2, %c0_3, %c0_4] : memref<2x128x128xf32, #tpu.memory_space<vmem>>, vector<2x128x128xf32>
    %8 = arith.truncf %7 : vector<2x128x128xf32> to vector<2x128x128xbf16>
    "tpu.trace_start"() <{level = 10 : i32, message = "bqd,bkd->bqk"}> : () -> ()
    %cst_5 = arith.constant dense<0.000000e+00> : vector<2x8x128xf32>
    %9 = tpu.matmul %4, %6, %cst_5 {dimension_numbers = #tpu.dot_dimension_numbers<[2], [2], [1], [1], [0, 0, 0, 1, 1, 1], [0], [0]>} : vector<2x8x128xbf16>, vector<2x128x128xbf16>, vector<2x8x128xf32> -> vector<2x8x128xf32>
    "tpu.trace_stop"() : () -> ()
    %cst_6 = arith.constant dense<0xFF800000> : vector<2x8xf32>
    %10 = vector.multi_reduction <maximumf>, %9, %cst_6 [2] : vector<2x8x128xf32> to vector<2x8xf32>
    %11 = vector.shape_cast %10 : vector<2x8xf32> to vector<2x8x1xf32>
    %12 = vector.broadcast %11 : vector<2x8x1xf32> to vector<2x8x128xf32>
    %13 = arith.subf %9, %12 : vector<2x8x128xf32>
    %14 = math.exp %13 : vector<2x8x128xf32>
    %cst_7 = arith.constant dense<0.000000e+00> : vector<2x8xf32>
    %15 = vector.multi_reduction <add>, %14, %cst_7 [2] : vector<2x8x128xf32> to vector<2x8xf32>
    %16 = vector.shape_cast %15 : vector<2x8xf32> to vector<2x8x1xf32>
    %17 = tpu.iota {dimensions = array<i32: 0>} : vector<2x8x128xi32>
    %c0_i32 = arith.constant 0 : i32
    %18 = vector.broadcast %c0_i32 : i32 to vector<2x8x128xi32>
    %19 = arith.addi %17, %18 : vector<2x8x128xi32>
    %20 = tpu.iota {dimensions = array<i32: 1>} : vector<2x8x128xi32>
    %21 = tpu.iota {dimensions = array<i32: 2>} : vector<2x8x128xi32>
    %c3_i32 = arith.constant 3 : i32
    %22 = vector.broadcast %c3_i32 : i32 to vector<2x8x128xi32>
    %23 = arith.shli %19, %22 : vector<2x8x128xi32>
    %24 = arith.addi %23, %20 : vector<2x8x128xi32>
    %c7_i32 = arith.constant 7 : i32
    %25 = vector.broadcast %c7_i32 : i32 to vector<2x8x128xi32>
    %26 = arith.shli %24, %25 : vector<2x8x128xi32>
    %27 = arith.addi %26, %21 : vector<2x8x128xi32>
    %c0_i32_8 = arith.constant 0 : i32
    %28 = vector.broadcast %c0_i32_8 : i32 to vector<2x8x128xi32>
    %29 = arith.xori %27, %28 : vector<2x8x128xi32>
    %c16_i32 = arith.constant 16 : i32
    %30 = vector.broadcast %c16_i32 : i32 to vector<2x8x128xi32>
    %31 = arith.shrui %29, %30 : vector<2x8x128xi32>
    %32 = arith.xori %29, %31 : vector<2x8x128xi32>
    %c2146121005_i32 = arith.constant 2146121005 : i32
    %33 = vector.broadcast %c2146121005_i32 : i32 to vector<2x8x128xi32>
    %34 = arith.muli %32, %33 : vector<2x8x128xi32>
    %c15_i32 = arith.constant 15 : i32
    %35 = vector.broadcast %c15_i32 : i32 to vector<2x8x128xi32>
    %36 = arith.shrui %34, %35 : vector<2x8x128xi32>
    %37 = arith.xori %34, %36 : vector<2x8x128xi32>
    %c-2073254261_i32 = arith.constant -2073254261 : i32
    %38 = vector.broadcast %c-2073254261_i32 : i32 to vector<2x8x128xi32>
    %39 = arith.muli %37, %38 : vector<2x8x128xi32>
    %c16_i32_9 = arith.constant 16 : i32
    %40 = vector.broadcast %c16_i32_9 : i32 to vector<2x8x128xi32>
    %41 = arith.shrui %39, %40 : vector<2x8x128xi32>
    %42 = arith.xori %39, %41 : vector<2x8x128xi32>
    %c31_i32 = arith.constant 31 : i32
    %43 = vector.broadcast %c31_i32 : i32 to vector<2x8x128xi32>
    %44 = arith.shrui %42, %43 : vector<2x8x128xi32>
    %c0_i32_10 = arith.constant 0 : i32
    %45 = vector.broadcast %c0_i32_10 : i32 to vector<2x8x128xi32>
    %46 = arith.cmpi eq, %44, %45 : vector<2x8x128xi32>
    %47 = tpu.reciprocal %16 {approx = true} : vector<2x8x1xf32> -> vector<2x8x1xf32>
    %cst_11 = arith.constant 2.000000e+00 : f32
    %48 = vector.broadcast %cst_11 : f32 to vector<2x8x1xf32>
    %49 = arith.mulf %48, %47 : vector<2x8x1xf32>
    %50 = vector.broadcast %49 : vector<2x8x1xf32> to vector<2x8x128xf32>
    %51 = arith.mulf %14, %50 : vector<2x8x128xf32>
    %cst_12 = arith.constant 0.000000e+00 : f32
    %52 = vector.broadcast %cst_12 : f32 to vector<2x8x128xf32>
    %53 = arith.select %46, %51, %52 : vector<2x8x128xi1>, vector<2x8x128xf32>
    %54 = arith.truncf %53 : vector<2x8x128xf32> to vector<2x8x128xbf16>
    "tpu.trace_start"() <{level = 10 : i32, message = "bqk,bkd->bqd"}> : () -> ()
    %cst_13 = arith.constant dense<0.000000e+00> : vector<2x8x128xf32>
    %55 = tpu.matmul %54, %8, %cst_13 {dimension_numbers = #tpu.dot_dimension_numbers<[2], [1], [1], [2], [0, 0, 0, 1, 1, 2], [0], [0]>} : vector<2x8x128xbf16>, vector<2x128x128xbf16>, vector<2x8x128xf32> -> vector<2x8x128xf32>
    "tpu.trace_stop"() : () -> ()
    %c0_14 = arith.constant 0 : index
    %c0_15 = arith.constant 0 : index
    %c0_16 = arith.constant 0 : index
    %56 = vector.load %arg2[%c0_14, %c0_15, %c0_16] : memref<2x8x128xf32, #tpu.memory_space<vmem>>, vector<2x8x128xf32>
    tpu.vector_store %arg2[%c0_14, %c0_15, %c0_16], %55 {strides = array<i32>} : memref<2x8x128xf32, #tpu.memory_space<vmem>>, vector<2x8x128xf32>,
    return
  }
}

</mosaic_0001>

<bundles_post_ra>
// kernel: tpu_custom_call.1
= control target key start
LH: loop header
LB: loop body
LE: loop exit
PB: predicated region body
PF: predicated region fallthrough
CT: control target
= control target key end

     0   :  { %7 = vsyncpa [#allocation3], 0  ;;  %s667_s0 = inlined_call_operand.hbm [shape: f32[2,136,128], index: 0, kind: input, shape index: {}]   ;;  %s668_s1 = inlined_call_operand.hbm [shape: f32[2,128,128], index: 1, kind: input, shape index: {}]   ;;  %s669_s2 = inlined_call_operand.hbm [shape: f32[2,8,128], index: 2, kind: output, shape index: {}]  }
   0x1   :  { %8 = vsyncpa [#allocation6], 0 }
   0x2   :  { %9 = vsyncpa [#allocation4], 0  ;;  %s579_s9 = smov [#allocation2]  }
   0x3   :  { %s15_s10 = sshll.u32 %s579_s9, 4  ;;  %s16_s10 = int_to_ptr.vmem [resolvable:$true] %s15_s10 }
   0x4   :  { %s521_s11 = scalar_lea.vmem %s16_s10, 4352  ;;  %p526_p1 = scmp.lt.s32.totalorder %s16_s10, %s16_s10 }
   0x5   :  { %p522_p0 = scmp.ne.s32.totalorder %s16_s10, %s521_s11  ;;  %p527_p2 = scmp.lt.s32.totalorder %s521_s11, %s521_s11 }
   0x7   :  { %p528_p3 = por %p527_p2, %p526_p1 }
   0x9   :  { %p529_p4 = pnand %p528_p3, %p522_p0 }
   0xb   :  { %532 = shalt.err (!%p529_p4)
}
   0xc   :  { %s580_s12 = smov 128   ;;  %s581_s13 = smov 8  }
   0xd   :  { %21 = dma.hbm_to_vmem [thread:$0]  %s667_s0, 4352, %s16_s10, [#allocation3], %s580_s12, %s580_s12, %s581_s13  }
   0xe   :  { %s582_s16 = smov [#allocation5]  }
   0xf   :  { %s27_s17 = sshll.u32 %s582_s16, 4  ;;  %s28_s17 = int_to_ptr.vmem [resolvable:$true] %s27_s17 }
  0x10   :  { %s541_s18 = scalar_lea.vmem %s28_s17, 4096  ;;  %p546_p6 = scmp.lt.s32.totalorder %s28_s17, %s28_s17 }
  0x11   :  { %p542_p5 = scmp.ne.s32.totalorder %s28_s17, %s541_s18  ;;  %p547_p7 = scmp.lt.s32.totalorder %s541_s18, %s541_s18 }
  0x13   :  { %p548_p8 = por %p547_p7, %p546_p6 }
  0x15   :  { %p549_p9 = pnand %p548_p8, %p542_p5 }
  0x17   :  { %552 = shalt.err (!%p549_p9)
}
  0x18   :  { %33 = dma.hbm_to_vmem [thread:$0]  %s668_s1, 4096, %s28_s17, [#allocation6], %s580_s12, %s580_s12, %s581_s13  }
  0x19   :  { %573 = dma.done.wait [#allocation3], 4352  }
  0x1a   :  { %574 = vsyncadd [#allocation3], 4294962944 }
  0x1b   :  { %575 = dma.done.wait [#allocation6], 4096  }
  0x1c   :  { %576 = vsyncadd [#allocation6], 4294963200  ;;  %v583_v0 = vmov 0.0   ;;  %vm584_vm0 = vmmov 0   ;;  %v56_v1 = vld [vmem:[#allocation2 + $0x78] sm:$0xff]  ;;  %v57_v2 = vld [vmem:[#allocation2 + $0x80] sm:$0xff] }
  0x1d   :  { %418 = vmatprep.subr.bf16.mxu0 %v583_v0  ;;  %438 = vmatprep.subr.bf16.mxu1 %v583_v0  ;;  %v73_v3 = vld [vmem:[#allocation2 + $0x100] sm:$0xff]  ;;  %v86_v4 = vpack.c.bf16 %v57_v2, %v56_v1  ;;  %v74_v5 = vld [vmem:[#allocation2 + $0x108] sm:$0xff]  ;;  %v55_v8 = vld [vmem:[#allocation2 + $0x70] sm:$0xff]  ;;  %s585_s0 = smov [#allocation7]  }
  0x1e   :  { %434 = vmatprep.mubr.msk.bf16.mxu0 %vm584_vm0, %v583_v0  ;;  %454 = vmatprep.mubr.msk.bf16.mxu1 %vm584_vm0, %v583_v0  ;;  %v94_v6 = vpack.c.bf16 %v74_v5, %v73_v3  ;;  %v54_v7 = vld [vmem:[#allocation2 + $0x68] sm:$0xff]  ;;  %v71_v9 = vld [vmem:[#allocation2 + $0xf0] sm:$0xff]  ;;  %v72_v10 = vld [vmem:[#allocation2 + $0xf8] sm:$0xff]  ;;  %s363_s1 = sshll.u32 %s585_s0, 4  ;;  %s364_s1 = int_to_ptr.vmem [resolvable:$true] %s363_s1 }
  0x1f   :  { %419 = vmatpush3.bf16.xpose.msra.mxu0 %v86_v4  ;;  %v85_v11 = vpack.c.bf16 %v55_v8, %v54_v7  ;;  %v93_v12 = vpack.c.bf16 %v72_v10, %v71_v9  ;;  %v52_v13 = vld [vmem:[#allocation2 + $0x58] sm:$0xff]  ;;  %v53_v14 = vld [vmem:[#allocation2 + $0x60] sm:$0xff]  ;;  %v70_v16 = vld [vmem:[#allocation2 + $0xe8] sm:$0xff]  ;;  %s553_s21 = scalar_lea.vmem %s364_s1, 256  ;;  %p558_p11 = scmp.lt.s32.totalorder %s364_s1, %s364_s1 }
  0x20   :  { %439 = vmatpush3.bf16.xpose.msra.mxu1 %v94_v6  ;;  %420 = vmatprep.subr.bf16.mxu0 %v583_v0  ;;  %v69_v15 = vld [vmem:[#allocation2 + $0xe0] sm:$0xff]  ;;  %v84_v17 = vpack.c.bf16 %v53_v14, %v52_v13  ;;  %v50_v19 = vld [vmem:[#allocation2 + $0x48] sm:$0xff]  ;;  %v51_v20 = vld [vmem:[#allocation2 + $0x50] sm:$0xff]  ;;  %p554_p10 = scmp.ne.s32.totalorder %s364_s1, %s553_s21  ;;  %p559_p12 = scmp.lt.s32.totalorder %s553_s21, %s553_s21 }
  0x21   :  { %440 = vmatprep.subr.bf16.mxu1 %v583_v0  ;;  %v92_v18 = vpack.c.bf16 %v70_v16, %v69_v15  ;;  %v67_v21 = vld [vmem:[#allocation2 + $0xd0] sm:$0xff]  ;;  %v68_v22 = vld [vmem:[#allocation2 + $0xd8] sm:$0xff]  ;;  %v83_v23 = vpack.c.bf16 %v51_v20, %v50_v19  ;;  %v49_v26 = vld [vmem:[#allocation2 + $0x40] sm:$0xff] }
  0x22   :  { %v91_v24 = vpack.c.bf16 %v68_v22, %v67_v21  ;;  %v48_v25 = vld [vmem:[#allocation2 + $0x38] sm:$0xff]  ;;  %v65_v27 = vld [vmem:[#allocation2 + $0xc0] sm:$0xff]  ;;  %v66_v28 = vld [vmem:[#allocation2 + $0xc8] sm:$0xff]  ;;  %p560_p13 = por %p559_p12, %p558_p11 }
  0x23   :  { %v82_v29 = vpack.c.bf16 %v49_v26, %v48_v25  ;;  %v90_v30 = vpack.c.bf16 %v66_v28, %v65_v27  ;;  %v46_v31 = vld [vmem:[#allocation2 + $0x28] sm:$0xff]  ;;  %v47_v32 = vld [vmem:[#allocation2 + $0x30] sm:$0xff]  ;;  %v64_v34 = vld [vmem:[#allocation2 + $0xb8] sm:$0xff] }
  0x24   :  { %v63_v33 = vld [vmem:[#allocation2 + $0xb0] sm:$0xff]  ;;  %v81_v35 = vpack.c.bf16 %v47_v32, %v46_v31  ;;  %v44_v37 = vld [vmem:[#allocation2 + $0x18] sm:$0xff]  ;;  %v45_v38 = vld [vmem:[#allocation2 + $0x20] sm:$0xff]  ;;  %p561_p0 = pnand %p560_p13, %p554_p10 }
  0x25   :  { %v89_v36 = vpack.c.bf16 %v64_v34, %v63_v33  ;;  %v61_v39 = vld [vmem:[#allocation2 + $0xa0] sm:$0xff]  ;;  %v62_v40 = vld [vmem:[#allocation2 + $0xa8] sm:$0xff]  ;;  %v80_v41 = vpack.c.bf16 %v45_v38, %v44_v37  ;;  %v43_v44 = vld [vmem:[#allocation2 + $0x10] sm:$0xff] }
  0x26   :  { %v88_v42 = vpack.c.bf16 %v62_v40, %v61_v39  ;;  %v42_v43 = vld [vmem:[#allocation2 + $0x8] sm:$0xff]  ;;  %v59_v45 = vld [vmem:[#allocation2 + $0x90] sm:$0xff]  ;;  %v60_v46 = vld [vmem:[#allocation2 + $0x98] sm:$0xff] }
  0x27   :  { %421 = vmatpush3.bf16.xpose.msra.mxu0 %v85_v11  ;;  %v79_v47 = vpack.c.bf16 %v43_v44, %v42_v43  ;;  %v41_v48 = vld [vmem:[#allocation2] sm:$0xff]  ;;  %v87_v49 = vpack.c.bf16 %v60_v46, %v59_v45  ;;  %v58_v50 = vld [vmem:[#allocation2 + $0x88] sm:$0xff]  ;;  %v107_v2 = vld [vmem:[#allocation5 + $0x60] sm:$0xff] }
  0x28   :  { %441 = vmatpush3.bf16.xpose.msra.mxu1 %v93_v12  ;;  %422 = vmatprep.subr.bf16.mxu0 %v583_v0  ;;  %v75_v51 = vmul.f32 0.088388346, %v41_v48  ;;  %v76_v52 = vmul.f32 0.088388346, %v58_v50  ;;  %v109_v63 = vld [vmem:[#allocation5 + $0x70] sm:$0xff]  ;;  %v110_v1 = vld [vmem:[#allocation5 + $0x78] sm:$0xff] }
  0x29   :  { %442 = vmatprep.subr.bf16.mxu1 %v583_v0  ;;  %v134_v3 = vpack.c.bf16 %v110_v1, %v109_v63  ;;  %v108_v4 = vld [vmem:[#allocation5 + $0x68] sm:$0xff]  ;;  %v125_v5 = vld [vmem:[#allocation5 + $0xf0] sm:$0xff]  ;;  %v126_v6 = vld [vmem:[#allocation5 + $0xf8] sm:$0xff] }
  0x2a   :  { %v77_v53 = vpack.c.bf16 %v75_v51, %v75_v51  ;;  %v78_v54 = vpack.c.bf16 %v76_v52, %v76_v52  ;;  %v142_v7 = vpack.c.bf16 %v126_v6, %v125_v5  ;;  %v123_v8 = vld [vmem:[#allocation5 + $0xe0] sm:$0xff]  ;;  %v133_v9 = vpack.c.bf16 %v108_v4, %v107_v2  ;;  %v124_v10 = vld [vmem:[#allocation5 + $0xe8] sm:$0xff]  ;;  %v105_v11 = vld [vmem:[#allocation5 + $0x50] sm:$0xff] }
  0x2b   :  { %v106_v12 = vld [vmem:[#allocation5 + $0x58] sm:$0xff]  ;;  %v141_v13 = vpack.c.bf16 %v124_v10, %v123_v8  ;;  %v121_v25 = vld [vmem:[#allocation5 + $0xd0] sm:$0xff]  ;;  %v119_v31 = vld [vmem:[#allocation5 + $0xc0] sm:$0xff] }
  0x2c   :  { %v132_v14 = vpack.c.bf16 %v106_v12, %v105_v11  ;;  %v122_v27 = vld [vmem:[#allocation5 + $0xd8] sm:$0xff]  ;;  %v120_v33 = vld [vmem:[#allocation5 + $0xc8] sm:$0xff]  ;;  %v117_v37 = vld [vmem:[#allocation5 + $0xb0] sm:$0xff] }
  0x2d   :  { %v140_v28 = vpack.c.bf16 %v122_v27, %v121_v25  ;;  %v139_v34 = vpack.c.bf16 %v120_v33, %v119_v31  ;;  %v118_v39 = vld [vmem:[#allocation5 + $0xb8] sm:$0xff]  ;;  %v115_v43 = vld [vmem:[#allocation5 + $0xa0] sm:$0xff]  ;;  %v116_v45 = vld [vmem:[#allocation5 + $0xa8] sm:$0xff] }
  0x2e   :  { %v138_v40 = vpack.c.bf16 %v118_v39, %v117_v37  ;;  %v137_v46 = vpack.c.bf16 %v116_v45, %v115_v43  ;;  %v96_v48 = vld [vmem:[#allocation5 + $0x8] sm:$0xff]  ;;  %v114_v51 = vld [vmem:[#allocation5 + $0x98] sm:$0xff] }
  0x2f   :  { %423 = vmatpush3.bf16.xpose.msra.mxu0 %v84_v17 }
  0x30   :  { %443 = vmatpush3.bf16.xpose.msra.mxu1 %v92_v18  ;;  %424 = vmatprep.subr.bf16.mxu0 %v583_v0 }
  0x31   :  { %444 = vmatprep.subr.bf16.mxu1 %v583_v0 }
  0x37   :  { %425 = vmatpush3.bf16.xpose.msra.mxu0 %v83_v23  ;;  %v103_v23 = vld [vmem:[#allocation5 + $0x40] sm:$0xff] }
  0x38   :  { %445 = vmatpush3.bf16.xpose.msra.mxu1 %v91_v24  ;;  %426 = vmatprep.subr.bf16.mxu0 %v583_v0  ;;  %v104_v24 = vld [vmem:[#allocation5 + $0x48] sm:$0xff] }
  0x39   :  { %446 = vmatprep.subr.bf16.mxu1 %v583_v0  ;;  %v131_v26 = vpack.c.bf16 %v104_v24, %v103_v23 }
  0x3f   :  { %427 = vmatpush3.bf16.xpose.msra.mxu0 %v82_v29  ;;  %v101_v29 = vld [vmem:[#allocation5 + $0x30] sm:$0xff] }
  0x40   :  { %447 = vmatpush3.bf16.xpose.msra.mxu1 %v90_v30  ;;  %428 = vmatprep.subr.bf16.mxu0 %v583_v0  ;;  %v102_v30 = vld [vmem:[#allocation5 + $0x38] sm:$0xff] }
  0x41   :  { %448 = vmatprep.subr.bf16.mxu1 %v583_v0  ;;  %v130_v32 = vpack.c.bf16 %v102_v30, %v101_v29 }
  0x47   :  { %429 = vmatpush3.bf16.xpose.msra.mxu0 %v81_v35  ;;  %v99_v35 = vld [vmem:[#allocation5 + $0x20] sm:$0xff] }
  0x48   :  { %449 = vmatpush3.bf16.xpose.msra.mxu1 %v89_v36  ;;  %430 = vmatprep.subr.bf16.mxu0 %v583_v0  ;;  %v100_v36 = vld [vmem:[#allocation5 + $0x28] sm:$0xff] }
  0x49   :  { %450 = vmatprep.subr.bf16.mxu1 %v583_v0  ;;  %v129_v38 = vpack.c.bf16 %v100_v36, %v99_v35 }
  0x4f   :  { %431 = vmatpush3.bf16.xpose.msra.mxu0 %v80_v41  ;;  %v97_v41 = vld [vmem:[#allocation5 + $0x10] sm:$0xff] }
  0x50   :  { %451 = vmatpush3.bf16.xpose.msra.mxu1 %v88_v42  ;;  %432 = vmatprep.subr.bf16.mxu0 %v583_v0  ;;  %v98_v42 = vld [vmem:[#allocation5 + $0x18] sm:$0xff] }
  0x51   :  { %452 = vmatprep.subr.bf16.mxu1 %v583_v0  ;;  %v128_v44 = vpack.c.bf16 %v98_v42, %v97_v41 }
  0x57   :  { %433 = vmatpush3.bf16.xpose.msra.mxu0 %v79_v47  ;;  %v95_v47 = vld [vmem:[#allocation5] sm:$0xff] }
  0x58   :  { %453 = vmatpush3.bf16.xpose.msra.mxu1 %v87_v49  ;;  %458 = vmatprep.subr.bf16.mxu0 %v583_v0  ;;  %v113_v49 = vld [vmem:[#allocation5 + $0x90] sm:$0xff]  ;;  %v127_v50 = vpack.c.bf16 %v96_v48, %v95_v47 }
  0x59   :  { %478 = vmatprep.subr.bf16.mxu1 %v583_v0  ;;  %v136_v52 = vpack.c.bf16 %v114_v51, %v113_v49 }
  0x5e   :  { %435 = vmatmul.mubr.bf16.vlgmr.msra.gmra.mxu0 %v77_v53  ;;  %v111_v53 = vld [vmem:[#allocation5 + $0x80] sm:$0xff] }
  0x5f   :  { %455 = vmatmul.mubr.bf16.vlgmr.msra.gmra.mxu1 %v78_v54  ;;  %474 = vmatprep.mubr.msk.bf16.mxu0 %vm584_vm0, %v583_v0  ;;  %v112_v54 = vld [vmem:[#allocation5 + $0x88] sm:$0xff] }
  0x60   :  { %494 = vmatprep.mubr.msk.bf16.mxu1 %vm584_vm0, %v583_v0  ;;  %459 = vmatpush3.bf16.msra.mxu0 %v134_v3 }
  0x61   :  { %460 = vmatprep.subr.bf16.mxu0 %v583_v0  ;;  %479 = vmatpush3.bf16.msra.mxu1 %v142_v7 }
  0x62   :  { %480 = vmatprep.subr.bf16.mxu1 %v583_v0 }
  0x64   :  { %461 = vmatpush3.bf16.msra.mxu0 %v133_v9 }
  0x65   :  { %462 = vmatprep.subr.bf16.mxu0 %v583_v0  ;;  %481 = vmatpush3.bf16.msra.mxu1 %v141_v13 }
  0x66   :  { %482 = vmatprep.subr.bf16.mxu1 %v583_v0 }
  0x68   :  { %463 = vmatpush3.bf16.msra.mxu0 %v132_v14 }
  0x69   :  { %464 = vmatprep.subr.bf16.mxu0 %v583_v0  ;;  %483 = vmatpush3.bf16.msra.mxu1 %v140_v28 }
  0x6a   :  { %484 = vmatprep.subr.bf16.mxu1 %v583_v0 }
  0x6c   :  { %465 = vmatpush3.bf16.msra.mxu0 %v131_v26 }
  0x6d   :  { %466 = vmatprep.subr.bf16.mxu0 %v583_v0  ;;  %485 = vmatpush3.bf16.msra.mxu1 %v139_v34 }
  0x6e   :  { %486 = vmatprep.subr.bf16.mxu1 %v583_v0 }
  0x70   :  { %467 = vmatpush3.bf16.msra.mxu0 %v130_v32 }
  0x71   :  { %468 = vmatprep.subr.bf16.mxu0 %v583_v0  ;;  %487 = vmatpush3.bf16.msra.mxu1 %v138_v40 }
  0x72   :  { %488 = vmatprep.subr.bf16.mxu1 %v583_v0 }
  0x74   :  { %469 = vmatpush3.bf16.msra.mxu0 %v129_v38 }
  0x75   :  { %470 = vmatprep.subr.bf16.mxu0 %v583_v0  ;;  %489 = vmatpush3.bf16.msra.mxu1 %v137_v46 }
  0x76   :  { %490 = vmatprep.subr.bf16.mxu1 %v583_v0 }
  0x78   :  { %471 = vmatpush3.bf16.msra.mxu0 %v128_v44 }
  0x79   :  { %472 = vmatprep.subr.bf16.mxu0 %v583_v0  ;;  %491 = vmatpush3.bf16.msra.mxu1 %v136_v52 }
  0x7a   :  { %492 = vmatprep.subr.bf16.mxu1 %v583_v0 }
  0x7c   :  { %473 = vmatpush3.bf16.msra.mxu0 %v127_v50 }
 0x11e   :  { %v177_v55 = vpop.f32.mrf.mxu0 }
 0x11f   :  { %v217_v56 = vpop.f32.mrf.mxu1  ;;  %223 = vmax.xlane.f32.xlu0 %v177_v55 }
 0x120   :  { %v436_v57 = vpop.f32.mrf.mxu0 }
 0x121   :  { %v456_v58 = vpop.f32.mrf.mxu1 }
 0x122   :  { %v180_v59 = vpop.f32.mrf.mxu0 }
 0x123   :  { %v220_v60 = vpop.f32.mrf.mxu1  ;;  %225 = vmax.xlane.f32.xlu0 %v217_v56 }
 0x124   :  { %v437_v61 = vpop.f32.mrf.mxu0 }
 0x125   :  { %v457_v62 = vpop.f32.mrf.mxu1 }
 0x1a8   :  { %v224_v15 = vpop.xlane.xlu0 %223 }
 0x1a9   :  { %v227_v16 = vsub.f32 %v177_v55, %v224_v15  ;;  %v135_v55 = vpack.c.bf16 %v112_v54, %v111_v53 }
 0x1ab   :  { %v229_v17 = vmul.f32 1.442695, %v227_v16  ;;  %493 = vmatpush3.bf16.msra.mxu1 %v135_v55 }
 0x1ac   :  { %v226_v18 = vpop.xlane.xlu0 %225 }
 0x1ad   :  { %505 = vpow2.f32 %v229_v17  ;;  %v228_v19 = vsub.f32 %v217_v56, %v226_v18  ;;  %v237_v56 = vlaneseq }
 0x1af   :  { %v231_v20 = vmul.f32 1.442695, %v228_v19  ;;  %v238_v57 = vshrl.u32 %v237_v56, 7  ;;  %v240_v58 = vand.u32 127, %v237_v56 }
 0x1b1   :  { %507 = vpow2.f32 %v231_v20  ;;  %v242_v59 = vshll.u32 %v238_v57, 7  ;;  %v241_v60 = vadd.s32 8, %v238_v57 }
 0x1b3   :  { %v244_v61 = vadd.s32 %v242_v59, %v240_v58  ;;  %v243_v62 = vshll.u32 %v241_v60, 7 }
 0x1b5   :  { %v246_v63 = vshrl.u32 %v244_v61, 16  ;;  %v245_v1 = vadd.s32 %v243_v62, %v240_v58 }
 0x1b7   :  { %v248_v2 = vxor.u32 %v246_v63, %v244_v61  ;;  %v247_v3 = vshrl.u32 %v245_v1, 16 }
 0x1b9   :  { %v250_v4 = vmul.u32 2146121005, %v248_v2  ;;  %v249_v5 = vxor.u32 %v247_v3, %v245_v1 }
 0x1ba   :  { %v644_v21 = vpop.eup %505 }
 0x1bb   :  { %233 = vadd.xlane.f32.xlu1 %v644_v21  ;;  %v252_v6 = vshrl.u32 %v250_v4, 15  ;;  %v251_v7 = vmul.u32 2146121005, %v249_v5 }
 0x1bd   :  { %v254_v8 = vxor.u32 %v252_v6, %v250_v4  ;;  %v253_v9 = vshrl.u32 %v251_v7, 15 }
 0x1be   :  { %v647_v22 = vpop.eup %507 }
 0x1bf   :  { %235 = vadd.xlane.f32.xlu1 %v647_v22  ;;  %v256_v0 = vmul.u32 2221713035, %v254_v8  ;;  %v255_v10 = vxor.u32 %v253_v9, %v251_v7 }
 0x1c1   :  { %v258_v12 = vshrl.u32 %v256_v0, 16  ;;  %v257_v13 = vmul.u32 2221713035, %v255_v10 }
 0x1c3   :  { %v260_v15 = vxor.u32 %v258_v12, %v256_v0  ;;  %v259_v16 = vshrl.u32 %v257_v13, 16 }
 0x1c5   :  { %v262_v17 = vshrl.u32 %v260_v15, 31  ;;  %v261_v18 = vxor.u32 %v259_v16, %v257_v13 }
 0x1c7   :  { %vm264_vm1 = vcmp.eq.s32.totalorder %v262_v17, 0  ;;  %v263_v23 = vshrl.u32 %v261_v18, 31 }
 0x1c8   :  { %vm376_vm2 = vmpackc.low %vm264_vm1, %vm264_vm1 }
 0x1c9   :  { %vm265_vm3 = vcmp.eq.s32.totalorder %v263_v23, 0 }
 0x1ca   :  { %vm379_vm4 = vmpackc.low %vm265_vm3, %vm265_vm3 }
 0x244   :  { %v234_v11 = vpop.xlane.xlu1 %233 }
 0x245   :  { %509 = vrcp.f32 %v234_v11 }
 0x248   :  { %v236_v14 = vpop.xlane.xlu1 %235 }
 0x249   :  { %511 = vrcp.f32 %v236_v14 }
 0x252   :  { %v510_v19 = vpop.eup %509 }
 0x253   :  { %v268_v20 = vmul.f32 2.0, %v510_v19 }
 0x255   :  { %v270_v24 = vmul.f32 %v644_v21, %v268_v20 }
 0x256   :  { %v512_v25 = vpop.eup %511 }
 0x257   :  { %v377_v26 = vpack.c.bf16 %v270_v24, %v270_v24  ;;  %v269_v27 = vmul.f32 2.0, %v512_v25 }
 0x259   :  { %v271_v28 = vmul.f32 %v647_v22, %v269_v27  ;;  %475 = vmatmul.mubr.msk.bf16.vlgmr.msra.gmra.mxu0 %vm376_vm2, %v377_v26 }
 0x25b   :  { %v380_v29 = vpack.c.bf16 %v271_v28, %v271_v28 }
 0x25d   :  { %495 = vmatmul.mubr.msk.bf16.vlgmr.msra.gmra.mxu1 %vm379_vm4, %v380_v29 }
 0x319   :  { %v310_v30 = vpop.f32.mrf.mxu0 }
 0x31a   :  { %356 = vst [vmem:[#allocation7] sm:$0xff] %v310_v30 }
 0x31b   :  { %v476_v31 = vpop.f32.mrf.mxu0 }
 0x31d   :  { %v313_v32 = vpop.f32.mrf.mxu0  ;;  %v350_v33 = vpop.f32.mrf.mxu1 }
 0x31e   :  { %357 = vst [vmem:[#allocation7 + $0x8] sm:$0xff] %v350_v33 }
 0x31f   :  { %v477_v21 = vpop.f32.mrf.mxu0  ;;  %v496_v34 = vpop.f32.mrf.mxu1 }
 0x320   :  { %564 = shalt.err (!%p561_p0)
}
 0x321   :  { %369 = dma.vmem_to_hbm [thread:$0]  %s364_s1, 256, %s669_s2, [#allocation4], %s580_s12, %s580_s12, %s581_s13   ;;  %v353_v22 = vpop.f32.mrf.mxu1 }
 0x323   :  { %v497_v35 = vpop.f32.mrf.mxu1 }
 0x324   :  { %577 = dma.done.wait [#allocation4], 256  }
 0x325   :  { %578 = vsyncadd [#allocation4], 4294967040 }
 0x326   :  { %373 = vsyncpa [#allocation3], 1 }
 0x327   :  { %374 = vsyncpa [#allocation6], 1 }
 0x328   :  { %375 = vsyncpa [#allocation4], 1 }

</bundles_post_ra>
